<compile_context>
chip_gen: v6e
topology: v6e:2x2x1
jax: 0.10.0
libtpu: 0.0.40
codegen_flags: <defaults>
</compile_context>

<pallas_src>
import functools

import jax
import jax.numpy as jnp
from jax.experimental import pallas as pl
from jax.experimental.pallas import tpu as pltpu


def _round_up(x, m):
    return ((x + m - 1) // m) * m


def _vmem_capacity_bytes():
    """Per-core VMEM capacity; narrow fallback only for the HW query itself."""
    try:
        return int(pltpu.get_tpu_info().vmem_capacity_bytes)
    except Exception:  # hw-info query only; never masks kernel errors
        return 64 << 20  # conservative: v7x per-TensorCore VMEM


def _mlp_kernel(num_linear, compute_dtype, x_ref, *refs):
    """Full MLP forward on one batch tile, entirely in VMEM.

    refs = (w0, b0, w1, b1, ..., w_{L-1}, b_{L-1}, out_ref)
    ReLU after every linear except the last (matches ReluNet.forward).
    Matmuls run in `compute_dtype` (bf16 by default) on the MXU with f32
    accumulation; bias add + ReLU happen in f32.
    """
    out_ref = refs[-1]
    wb = refs[:-1]

    h = x_ref[...].astype(compute_dtype)   # in-kernel cast: no wrapper pass over x
    for i in range(num_linear):
        w = wb[2 * i][...]                 # [in_i(_pad), out_pad]  compute_dtype
        b = wb[2 * i + 1][...]             # [1, out_pad]           float32
        acc = jnp.dot(h, w, preferred_element_type=jnp.float32) + b
        if i < num_linear - 1:
            acc = jnp.maximum(acc, 0.0)
            h = acc.astype(compute_dtype)  # back to MXU dtype for the next layer
        else:
            h = acc                        # keep final layer in f32
    out_ref[...] = h.astype(out_ref.dtype)


def prepare_relunet_params(weights, biases, compute_dtype=jnp.bfloat16):
    """One-time parameter prep (hoisted out of the hot path).

    weights : list of [in_i, out_i] (transposed vs. PyTorch Linear.weight)
    biases  : list of [out_i]

    The input feature dim is kept UN-padded (x streams at its real width and
    the MXU handles a small K); every output feature dim is padded to a
    multiple of 128 lanes so stores are lane-dense and later K dims align.
    """
    dims = [weights[0].shape[0]] + [w.shape[1] for w in weights]
    pdims = [dims[0]] + [_round_up(d, 128) for d in dims[1:]]

    ws, bs = [], []
    for i, (w, b) in enumerate(zip(weights, biases)):
        wp = jnp.pad(w, ((0, pdims[i] - w.shape[0]),
                         (0, pdims[i + 1] - w.shape[1]))).astype(compute_dtype)
        bp = jnp.pad(b, (0, pdims[i + 1] - b.shape[0])).astype(jnp.float32)
        ws.append(wp)
        bs.append(bp.reshape(1, -1))
    return {
        "weights": ws,
        "biases": bs,
        "dims": dims,
        "pdims": pdims,
        "compute_dtype": compute_dtype,
        "out_dim": dims[-1],
    }


def relunet_forward(x, params, *, batch_tile=None, out_dtype=None):
    """ReluNet forward with one fused pallas_call over pre-prepared params.

    x      : [B, input_dim] (any float dtype; cast to compute dtype in-kernel)
    params : output of prepare_relunet_params
    """
    ws, bs = params["weights"], params["biases"]
    pdims = params["pdims"]
    compute_dtype = params["compute_dtype"]
    out_dim = params["out_dim"]
    num_linear = len(ws)

    B, in_dim = x.shape
    assert in_dim == pdims[0], "x feature dim does not match prepared params"
    out_dtype = out_dtype or compute_dtype   # bf16 writeback in the perf config

    # ---- batch tiling ------------------------------------------------------
    # bf16 packs 16 rows per sublane group -> require %16 tiles for bf16.
    quantum = 8 * max(1, 4 // jnp.dtype(compute_dtype).itemsize)
    if batch_tile is None:
        # Target big tiles (up to 512) to amortize the ~0.35us/grid-step
        # overhead (and keep v6e/v7x's 256-wide MXU fed along M), but keep
        # >=4 grid steps when the batch allows so input/output DMAs overlap
        # compute and v7x's two TensorCores each see >=2 steps.
        min_steps = 4
        batch_tile = max(quantum,
                         min(512, _round_up(pl.cdiv(B, min_steps), quantum)))
    assert batch_tile % quantum == 0 and batch_tile > 0, (
        f"batch_tile must be a positive multiple of {quantum} for "
        f"{jnp.dtype(compute_dtype).name}")
    grid = (pl.cdiv(B, batch_tile),)   # ragged last block; no batch padding pass

    # ---- VMEM budget (per-generation cap, no hardcoded 96 MiB) -------------
    x_sz = jnp.dtype(x.dtype).itemsize
    o_sz = jnp.dtype(out_dtype).itemsize
    param_bytes = (sum(int(w.size) * w.dtype.itemsize for w in ws)
                   + sum(int(b.size) * b.dtype.itemsize for b in bs))
    est = (2 * param_bytes                              # params (double-buffered alloc)
           + 2 * batch_tile * pdims[0] * x_sz           # x tile, double-buffered
           + 2 * batch_tile * pdims[-1] * o_sz          # out tile, double-buffered
           + 3 * batch_tile * max(pdims) * 4            # f32 intermediates
           + (4 << 20))                                 # slack
    cap = _vmem_capacity_bytes() - (16 << 20)           # ~16 MiB headroom
    if est > cap:
        # TODO(synk): add a K/N-tiled (or pltpu.emit_pipeline per-layer) path
        # that streams weight tiles instead of keeping all layers resident;
        # needed once hidden_dim grows (threshold on v7x is ~half of v6e/v5e).
        raise NotImplementedError(
            f"Resident-weight MLP needs ~{est >> 20} MiB VMEM but only "
            f"{cap >> 20} MiB is available; K-tiled weight path not implemented.")
    vmem_limit = int(min(max(est, 16 << 20), cap))

    # ---- cost estimate for XLA scheduling of surrounding ops ----------------
    flops = 2 * B * sum(pdims[i] * pdims[i + 1] for i in range(num_linear))
    bytes_accessed = (B * in_dim * x_sz + param_bytes + B * pdims[-1] * o_sz)
    cost = pl.CostEstimate(flops=flops, transcendentals=0,
                           bytes_accessed=bytes_accessed)

    # ---- specs --------------------------------------------------------------
    # x block: last dim == full array dim (legal even when < 128 lanes) so the
    # streamed input DMA is 8x smaller than padding in_dim=16 up to 128.
    in_specs = [pl.BlockSpec((batch_tile, pdims[0]), lambda i: (i, 0))]
    params_flat = []
    for w, b in zip(ws, bs):
        in_specs.append(pl.BlockSpec(w.shape, lambda i: (0, 0)))
        in_specs.append(pl.BlockSpec(b.shape, lambda i: (0, 0)))
        params_flat.append(w)
        params_flat.append(b)
    out_specs = pl.BlockSpec((batch_tile, pdims[-1]), lambda i: (i, 0))

    out_padded = pl.pallas_call(
        functools.partial(_mlp_kernel, num_linear, compute_dtype),
        out_shape=jax.ShapeDtypeStruct((B, pdims[-1]), out_dtype),
        grid_spec=pltpu.PrefetchScalarGridSpec(
            num_scalar_prefetch=0,
            grid=grid,
            in_specs=in_specs,
            out_specs=out_specs,
        ),
        compiler_params=pltpu.CompilerParams(
            dimension_semantics=("parallel",),
            vmem_limit_bytes=vmem_limit,
        ),
        cost_estimate=cost,
    )(x, *params_flat)

    return out_padded[:, :out_dim]


def init_relunet_params(key, input_dim, output_dim, hidden_dim, num_layers):
    """Deterministic init mimicking torch.nn.Linear U(-1/sqrt(in), 1/sqrt(in)).

    Returns weights as [in, out] (transposed vs. PyTorch) and biases as [out].
    """
    dims = [input_dim] + [hidden_dim] * num_layers + [output_dim]
    weights, biases = [], []
    for i in range(len(dims) - 1):
        fan_in, fan_out = dims[i], dims[i + 1]
        key, kw, kb = jax.random.split(key, 3)
        bound = 1.0 / (fan_in ** 0.5)
        weights.append(jax.random.uniform(kw, (fan_in, fan_out), jnp.float32,
                                          -bound, bound))
        biases.append(jax.random.uniform(kb, (fan_out,), jnp.float32,
                                         -bound, bound))
    return weights, biases


def relunet_reference(x, weights, biases, compute_dtype=jnp.float32):
    """Plain-JAX reference of ReluNet.forward (same dtype recipe as the kernel)."""
    h = x.astype(compute_dtype)
    n = len(weights)
    for i in range(n):
        acc = jnp.dot(h, weights[i].astype(compute_dtype),
                      preferred_element_type=jnp.float32)
        acc = acc + biases[i].astype(jnp.float32)
        if i < n - 1:
            acc = jnp.maximum(acc, 0.0)
            h = acc.astype(compute_dtype)
        else:
            h = acc
    return h


if __name__ == "__main__":
    # Small shapes consistent with the module (hidden_dim default = 100).
    batch = 300          # not a multiple of the tile -> exercises ragged last block
    input_dim = 16
    hidden_dim = 100
    output_dim = 8
    num_layers = 2       # ReluNet default: two hidden layers -> 3 Linear layers

    key = jax.random.PRNGKey(0)
    key, kx = jax.random.split(key)
    x = jax.random.normal(kx, (batch, input_dim), jnp.float32)

    weights, biases = init_relunet_params(
        key, input_dim, output_dim, hidden_dim, num_layers
    )

    # 1) f32 path: tight check vs plain-JAX reference.
    params_f32 = prepare_relunet_params(weights, biases, compute_dtype=jnp.float32)
    out_f32 = jax.block_until_ready(relunet_forward(x, params_f32))
    ref_f32 = relunet_reference(x, weights, biases, jnp.float32)
    assert out_f32.shape == (batch, output_dim)
    assert out_f32.dtype == jnp.float32
    assert jnp.allclose(out_f32, ref_f32, atol=1e-4, rtol=1e-4), \
        "f32 mismatch vs reference"

    # 2) Default bf16-MXU perf path (bf16 params/activations/output,
    #    f32 accumulate) vs a bf16-matched reference.
    params_bf16 = prepare_relunet_params(weights, biases)   # bf16 (default)
    out_bf16 = jax.block_until_ready(relunet_forward(x, params_bf16))
    ref_bf16 = relunet_reference(x, weights, biases, jnp.bfloat16)
    assert out_bf16.shape == (batch, output_dim)
    assert jnp.allclose(out_bf16.astype(jnp.float32),
                        ref_bf16.astype(jnp.float32),
                        atol=2e-2, rtol=2e-2), "bf16 mismatch vs reference"

    print("KERNEL_OK")
</pallas_src>

<mosaic_0001>
module attributes {stable_mosaic.version = 11 : i64} {
  func.func @_mlp_kernel(%arg0: i32, %arg1: memref<80x16xf32, #tpu.memory_space<vmem>>, %arg2: memref<16x128xf32, #tpu.memory_space<vmem>>, %arg3: memref<1x128xf32, #tpu.memory_space<vmem>>, %arg4: memref<128x128xf32, #tpu.memory_space<vmem>>, %arg5: memref<1x128xf32, #tpu.memory_space<vmem>>, %arg6: memref<128x128xf32, #tpu.memory_space<vmem>>, %arg7: memref<1x128xf32, #tpu.memory_space<vmem>>, %arg8: memref<80x128xf32, #tpu.memory_space<vmem>>) attributes {dimension_semantics = [#tpu.dimension_semantics<parallel>], iteration_bounds = array<i64: 4>, scalar_prefetch = 0 : i64, scratch_operands = 0 : i64, tpu.core_type = #tpu.core_type<tc>, window_params = [{transform_indices = @transform_0, window_bounds = array<i64: 80, 16>}, {pipeline_mode = #tpu.pipeline_mode<synchronous>, transform_indices = @transform_1, window_bounds = array<i64: 16, 128>}, {pipeline_mode = #tpu.pipeline_mode<synchronous>, transform_indices = @transform_2, window_bounds = array<i64: 1, 128>}, {pipeline_mode = #tpu.pipeline_mode<synchronous>, transform_indices = @transform_3, window_bounds = array<i64: 128, 128>}, {pipeline_mode = #tpu.pipeline_mode<synchronous>, transform_indices = @transform_4, window_bounds = array<i64: 1, 128>}, {pipeline_mode = #tpu.pipeline_mode<synchronous>, transform_indices = @transform_5, window_bounds = array<i64: 128, 128>}, {pipeline_mode = #tpu.pipeline_mode<synchronous>, transform_indices = @transform_6, window_bounds = array<i64: 1, 128>}, {transform_indices = @transform_7, window_bounds = array<i64: 80, 128>}]} {
    %c0 = arith.constant 0 : index
    %c0_0 = arith.constant 0 : index
    %0 = vector.load %arg1[%c0, %c0_0] : memref<80x16xf32, #tpu.memory_space<vmem>>, vector<80x16xf32>
    %c0_1 = arith.constant 0 : index
    %c0_2 = arith.constant 0 : index
    %1 = vector.load %arg2[%c0_1, %c0_2] : memref<16x128xf32, #tpu.memory_space<vmem>>, vector<16x128xf32>
    %c0_3 = arith.constant 0 : index
    %c0_4 = arith.constant 0 : index
    %2 = vector.load %arg3[%c0_3, %c0_4] : memref<1x128xf32, #tpu.memory_space<vmem>>, vector<1x128xf32>
    %cst = arith.constant dense<0.000000e+00> : vector<80x128xf32>
    %3 = tpu.matmul %0, %1, %cst {dimension_numbers = #tpu.dot_dimension_numbers<[1], [0], [0], [1], [0, 0, 1, 1], [], []>} : vector<80x16xf32>, vector<16x128xf32>, vector<80x128xf32> -> vector<80x128xf32>
    %4 = vector.broadcast %2 : vector<1x128xf32> to vector<80x128xf32>
    %5 = arith.addf %3, %4 : vector<80x128xf32>
    %cst_5 = arith.constant 0.000000e+00 : f32
    %6 = vector.broadcast %cst_5 : f32 to vector<80x128xf32>
    %7 = arith.maximumf %5, %6 : vector<80x128xf32>
    %c0_6 = arith.constant 0 : index
    %c0_7 = arith.constant 0 : index
    %8 = vector.load %arg4[%c0_6, %c0_7] : memref<128x128xf32, #tpu.memory_space<vmem>>, vector<128x128xf32>
    %c0_8 = arith.constant 0 : index
    %c0_9 = arith.constant 0 : index
    %9 = vector.load %arg5[%c0_8, %c0_9] : memref<1x128xf32, #tpu.memory_space<vmem>>, vector<1x128xf32>
    %cst_10 = arith.constant dense<0.000000e+00> : vector<80x128xf32>
    %10 = tpu.matmul %7, %8, %cst_10 {dimension_numbers = #tpu.dot_dimension_numbers<[1], [0], [0], [1], [0, 0, 1, 1], [], []>} : vector<80x128xf32>, vector<128x128xf32>, vector<80x128xf32> -> vector<80x128xf32>
    %11 = vector.broadcast %9 : vector<1x128xf32> to vector<80x128xf32>
    %12 = arith.addf %10, %11 : vector<80x128xf32>
    %cst_11 = arith.constant 0.000000e+00 : f32
    %13 = vector.broadcast %cst_11 : f32 to vector<80x128xf32>
    %14 = arith.maximumf %12, %13 : vector<80x128xf32>
    %c0_12 = arith.constant 0 : index
    %c0_13 = arith.constant 0 : index
    %15 = vector.load %arg6[%c0_12, %c0_13] : memref<128x128xf32, #tpu.memory_space<vmem>>, vector<128x128xf32>
    %c0_14 = arith.constant 0 : index
    %c0_15 = arith.constant 0 : index
    %16 = vector.load %arg7[%c0_14, %c0_15] : memref<1x128xf32, #tpu.memory_space<vmem>>, vector<1x128xf32>
    %cst_16 = arith.constant dense<0.000000e+00> : vector<80x128xf32>
    %17 = tpu.matmul %14, %15, %cst_16 {dimension_numbers = #tpu.dot_dimension_numbers<[1], [0], [0], [1], [0, 0, 1, 1], [], []>} : vector<80x128xf32>, vector<128x128xf32>, vector<80x128xf32> -> vector<80x128xf32>
    %18 = vector.broadcast %16 : vector<1x128xf32> to vector<80x128xf32>
    %19 = arith.addf %17, %18 : vector<80x128xf32>
    %c0_17 = arith.constant 0 : index
    %c0_18 = arith.constant 0 : index
    %20 = vector.load %arg8[%c0_17, %c0_18] : memref<80x128xf32, #tpu.memory_space<vmem>>, vector<80x128xf32>
    tpu.vector_store %arg8[%c0_17, %c0_18], %19 {strides = array<i32>} : memref<80x128xf32, #tpu.memory_space<vmem>>, vector<80x128xf32>,
    return
  }
  func.func @transform_0(%arg0: i32) -> (i32, i32) {
    %c0_i32 = arith.constant 0 : i32
    %c0_i32_0 = arith.constant 0 : i32
    return %arg0, %c0_i32 : i32, i32
  }
  func.func @transform_1(%arg0: i32) -> (i32, i32) {
    %c0_i32 = arith.constant 0 : i32
    %c0_i32_0 = arith.constant 0 : i32
    %c0_i32_1 = arith.constant 0 : i32
    return %c0_i32, %c0_i32_0 : i32, i32
  }
  func.func @transform_2(%arg0: i32) -> (i32, i32) {
    %c0_i32 = arith.constant 0 : i32
    %c0_i32_0 = arith.constant 0 : i32
    %c0_i32_1 = arith.constant 0 : i32
    return %c0_i32, %c0_i32_0 : i32, i32
  }
  func.func @transform_3(%arg0: i32) -> (i32, i32) {
    %c0_i32 = arith.constant 0 : i32
    %c0_i32_0 = arith.constant 0 : i32
    %c0_i32_1 = arith.constant 0 : i32
    return %c0_i32, %c0_i32_0 : i32, i32
  }
  func.func @transform_4(%arg0: i32) -> (i32, i32) {
    %c0_i32 = arith.constant 0 : i32
    %c0_i32_0 = arith.constant 0 : i32
    %c0_i32_1 = arith.constant 0 : i32
    return %c0_i32, %c0_i32_0 : i32, i32
  }
  func.func @transform_5(%arg0: i32) -> (i32, i32) {
    %c0_i32 = arith.constant 0 : i32
    %c0_i32_0 = arith.constant 0 : i32
    %c0_i32_1 = arith.constant 0 : i32
    return %c0_i32, %c0_i32_0 : i32, i32
  }
  func.func @transform_6(%arg0: i32) -> (i32, i32) {
    %c0_i32 = arith.constant 0 : i32
    %c0_i32_0 = arith.constant 0 : i32
    %c0_i32_1 = arith.constant 0 : i32
    return %c0_i32, %c0_i32_0 : i32, i32
  }
  func.func @transform_7(%arg0: i32) -> (i32, i32) {
    %c0_i32 = arith.constant 0 : i32
    %c0_i32_0 = arith.constant 0 : i32
    return %arg0, %c0_i32 : i32, i32
  }
}

</mosaic_0001>

<bundles_post_ra>
// kernel: tpu_custom_call.1
= control target key start
LH: loop header
LB: loop body
LE: loop exit
PB: predicated region body
PF: predicated region fallthrough
CT: control target
= control target key end

     0   :  { %12 = vsyncpa [#allocation3], 0  ;;  %s1472_s0 = inlined_call_operand.vmem [shape: f32[300,16], index: 0, kind: input, shape index: {}]   ;;  %s1473_s1 = inlined_call_operand.vmem [shape: f32[16,128], index: 1, kind: input, shape index: {}]   ;;  %s1474_s2 = inlined_call_operand.vmem [shape: f32[1,128], index: 2, kind: input, shape index: {}]   ;;  %s1475_s3 = inlined_call_operand.vmem [shape: f32[128,128], index: 3, kind: input, shape index: {}]   ;;  %s1476_s4 = inlined_call_operand.vmem [shape: f32[1,128], index: 4, kind: input, shape index: {}]   ;;  %s1477_s5 = inlined_call_operand.vmem [shape: f32[128,128], index: 5, kind: input, shape index: {}]   ;;  %s1478_s6 = inlined_call_operand.vmem [shape: f32[1,128], index: 6, kind: input, shape index: {}]   ;;  %s1479_s7 = inlined_call_operand.hbm [shape: f32[300,128], index: 7, kind: output, shape index: {}]  }
   0x1   :  { %14 = vsyncpa [#allocation3 + $0x1], 0  ;;  %s1206_s24 = smov 0   ;;  %s1208_s25 = smov 0  }
   0x2   :  { %s1210_s26 = smov 0   ;;  %s1212_s27 = smov 0  }
   0x3 LB: > { %s1227_s28 = sadd.s32 4294967295, %s1161_s27   ;;  %s857_s29 = sadd.s32 4294967294, %s1161_s27   ;;  %s1161_s27 = sphi %s1212_s27, %s1485_s27   ;;  %s1157_s26 = sphi %s1210_s26, %s1484_s26   ;;  %s1153_s25 = sphi %s1208_s25, %s1483_s25   ;;  %s1149_s24 = sphi %s1206_s24, %s1482_s24  }
   0x4   : > { %s1231_s30 = sadd.s32 1, %s1161_s27   ;;  %s179_s8 = sadd.s32 1, %s1157_s26 }
   0x5   : > { %s176_s9 = ssub.s32 %s1161_s27, %s1231_s30  ;;  %p189_p0 = scmp.ne.s32.totalorder %s1157_s26, %s1153_s25 }
   0x6   : > { %p177_p1 = scmp.eq.s32.totalorder %s176_s9, 0  ;;  %p190_p2 = scmp.eq.s32.totalorder %s1227_s28, 3 }
   0x7   : > { %p195_p3 = scmp.ne.s32.totalorder %s1153_s25, %s1149_s24  ;;  %p196_p4 = scmp.eq.s32.totalorder %s857_s29, 3 }
   0x8   : > { %s1242_s10 = scalar_select %p177_p1, %s1157_s26, %s179_s8  }
   0x9   : > { %p1244_p5 = por %p190_p2, %p189_p0  ;;  %p1248_p6 = por %p196_p4, %p195_p3 }
   0xa   : > { %p860_p7 = scmp.ge.s32.totalorder %s1161_s27, 1  ;;  %p249_p8 = scmp.lt.s32.totalorder %s1161_s27, 5 }
   0xc   : > { %p250_p9 = pnand %p860_p7, %p249_p8 }
   0xd   : > { %s1261_s17 = smul.u32 (!%p250_p9), 10, %s1227_s28 }
   0xe   : > { %253 = sbr.rel (%p250_p9) target bundleno = 666 (0x29a), region = 48 }
   0xf   : > { %p290_p10 = scmp.lt.s32.totalorder (!%p250_p9), %s1261_s17, 37 }
  0x13   : > { %v315_v0 = vld [vmem:[%s1473_s1 + $0x8] sm:$0xff]  ;;  %v314_v1 = vld [vmem:[%s1473_s1] sm:$0xff]  ;;  %v494_v2 = vld [vmem:[%s1475_s3 + $0x78] sm:$0xff]  ;;  %s291_s29 = scalar_select %p290_p10, %s1261_s17, 37  ;;  %vm323_vm0 = vcmask 130048  }
  0x14   : > { %947 = vmatprep.subr.mxu0 %v315_v0  ;;  %966 = vmatprep.subr.mxu1 %v494_v2  ;;  %v493_v3 = vld [vmem:[%s1475_s3 + $0x70] sm:$0xff]  ;;  %v492_v4 = vld [vmem:[%s1475_s3 + $0x68] sm:$0xff]  ;;  %v491_v5 = vld [vmem:[%s1475_s3 + $0x60] sm:$0xff]  ;;  %s784_s20 = ssub.s32 (%p1244_p5), 38, %s1261_s17 }
  0x15   : > { %948 = vmatpush3.msra.mxu0 %v315_v0  ;;  %967 = vmatpush3.msra.mxu1 %v494_v2  ;;  %s861_s13 = sshll.u32 %s291_s29, 3  ;;  %v490_v6 = vld [vmem:[%s1475_s3 + $0x58] sm:$0xff]  ;;  %v489_v7 = vld [vmem:[%s1475_s3 + $0x50] sm:$0xff]  ;;  %v488_v11 = vld [vmem:[%s1475_s3 + $0x48] sm:$0xff]  ;;  %p785_p11 = scmp.lt.s32.totalorder (%p1244_p5), %s784_s20, 10 }
  0x16   : > { %949 = vmatprep.subr.mxu0 %v314_v1  ;;  %968 = vmatprep.subr.mxu1 %v493_v3  ;;  %s1283_s19 = scalar_lea.vmem %s1472_s0, %s861_s13  ;;  %v487_v14 = vld [vmem:[%s1475_s3 + $0x40] sm:$0xff]  ;;  %v486_v15 = vld [vmem:[%s1475_s3 + $0x38] sm:$0xff]  ;;  %v485_v18 = vld [vmem:[%s1475_s3 + $0x30] sm:$0xff]  ;;  %s282_s13 = sand.u32 1, %s1153_s25  }
  0x17   : > { %950 = vmatpush3.msra.mxu0 %v314_v1  ;;  %969 = vmatpush3.msra.mxu1 %v493_v3  ;;  %v304_v8 = vld [vmem:[%s1283_s19] sm:$0xff]  ;;  %v305_v9 = vld [vmem:[%s1283_s19 + $0x8] sm:$0xff]  ;;  %v306_v10 = vld [vmem:[%s1283_s19 + $0x10] sm:$0xff]  ;;  %s1412_s18 = scalar_lea.sflag [#allocation3], %s282_s13 }
  0x18   : > { %970 = vmatprep.subr.mxu1 %v492_v4  ;;  %951 = vmatprep.mubr.msk.f32.mxu0 %vm323_vm0, %v304_v8  ;;  %v307_v12 = vld [vmem:[%s1283_s19 + $0x18] sm:$0xff]  ;;  %v308_v13 = vld [vmem:[%s1283_s19 + $0x20] sm:$0xff]  ;;  %v309_v16 = vld [vmem:[%s1283_s19 + $0x28] sm:$0xff] }
  0x19   : > { %971 = vmatpush3.msra.mxu1 %v492_v4  ;;  %952 = vmatmul.mubr.msk.f32.vlgmr.msra.gmra.mxu0 %vm323_vm0, %v305_v9  ;;  %v310_v17 = vld [vmem:[%s1283_s19 + $0x30] sm:$0xff]  ;;  %v484_v19 = vld [vmem:[%s1475_s3 + $0x28] sm:$0xff]  ;;  %v311_v20 = vld [vmem:[%s1283_s19 + $0x38] sm:$0xff] }
  0x1a   : > { %972 = vmatprep.subr.mxu1 %v491_v5  ;;  %954 = vmatprep.mubr.msk.f32.mxu0 %vm323_vm0, %v306_v10  ;;  %v312_v21 = vld [vmem:[%s1283_s19 + $0x40] sm:$0xff]  ;;  %v313_v23 = vld [vmem:[%s1283_s19 + $0x48] sm:$0xff]  ;;  %v482_v24 = vld [vmem:[%s1475_s3 + $0x18] sm:$0xff]  ;;  %s1060_s19 = smul.u32 80, %s282_s13 }
  0x1b   : > { %973 = vmatpush3.msra.mxu1 %v491_v5  ;;  %v483_v22 = vld [vmem:[%s1475_s3 + $0x20] sm:$0xff]  ;;  %v481_v25 = vld [vmem:[%s1475_s3 + $0x10] sm:$0xff]  ;;  %v480_v26 = vld [vmem:[%s1475_s3 + $0x8] sm:$0xff] }
  0x1c   : > { %974 = vmatprep.subr.mxu1 %v490_v6  ;;  %v479_v27 = vld [vmem:[%s1475_s3] sm:$0xff]  ;;  %v642_v28 = vld [vmem:[%s1477_s5 + $0x78] sm:$0xff]  ;;  %v641_v29 = vld [vmem:[%s1477_s5 + $0x70] sm:$0xff]  ;;  %s1398_s16 = scalar_lea.vmem [#allocation2], %s1060_s19 }
  0x1d   : > { %975 = vmatpush3.msra.mxu1 %v490_v6  ;;  %955 = vmatmul.mubr.msk.f32.gmra.mxu0 %vm323_vm0, %v307_v12  ;;  %v640_v30 = vld [vmem:[%s1477_s5 + $0x68] sm:$0xff]  ;;  %v639_v31 = vld [vmem:[%s1477_s5 + $0x60] sm:$0xff]  ;;  %v638_v32 = vld [vmem:[%s1477_s5 + $0x58] sm:$0xff] }
  0x1e   : > { %976 = vmatprep.subr.mxu1 %v489_v7  ;;  %957 = vmatprep.mubr.msk.f32.mxu0 %vm323_vm0, %v308_v13  ;;  %v637_v33 = vld [vmem:[%s1477_s5 + $0x50] sm:$0xff]  ;;  %v636_v34 = vld [vmem:[%s1477_s5 + $0x48] sm:$0xff]  ;;  %v635_v35 = vld [vmem:[%s1477_s5 + $0x40] sm:$0xff] }
  0x1f   : > { %977 = vmatpush3.msra.mxu1 %v489_v7  ;;  %1013 = vmatprep.subr.mxu0 %v642_v28  ;;  %v634_v36 = vld [vmem:[%s1477_s5 + $0x38] sm:$0xff]  ;;  %v633_v37 = vld [vmem:[%s1477_s5 + $0x30] sm:$0xff]  ;;  %v632_v38 = vld [vmem:[%s1477_s5 + $0x28] sm:$0xff] }
  0x20   : > { %978 = vmatprep.subr.mxu1 %v488_v11  ;;  %1014 = vmatpush3.msra.mxu0 %v642_v28  ;;  %v631_v39 = vld [vmem:[%s1477_s5 + $0x20] sm:$0xff]  ;;  %v630_v7 = vld [vmem:[%s1477_s5 + $0x18] sm:$0xff]  ;;  %v629_v8 = vld [vmem:[%s1477_s5 + $0x10] sm:$0xff] }
  0x21   : > { %979 = vmatpush3.msra.mxu1 %v488_v11  ;;  %958 = vmatmul.mubr.msk.f32.gmra.mxu0 %vm323_vm0, %v309_v16  ;;  %v862_v40 = vld [vmem:[%s1474_s2] ss:$0 sm:$0xff]  ;;  %v628_v9 = vld [vmem:[%s1477_s5 + $0x8] sm:$0xff] }
  0x22   : > { %980 = vmatprep.subr.mxu1 %v487_v14  ;;  %960 = vmatprep.mubr.msk.f32.mxu0 %vm323_vm0, %v310_v17  ;;  %v627_v10 = vld [vmem:[%s1477_s5] sm:$0xff] }
  0x23   : > { %981 = vmatpush3.msra.mxu1 %v487_v14  ;;  %1015 = vmatprep.subr.mxu0 %v641_v29  ;;  %v873_v11 = vld [vmem:[%s1476_s4] ss:$0 sm:$0xff] }
  0x24   : > { %982 = vmatprep.subr.mxu1 %v486_v15  ;;  %1016 = vmatpush3.msra.mxu0 %v641_v29 }
  0x25   : > { %983 = vmatpush3.msra.mxu1 %v486_v15  ;;  %961 = vmatmul.mubr.msk.f32.gmra.mxu0 %vm323_vm0, %v311_v20 }
  0x26   : > { %984 = vmatprep.subr.mxu1 %v485_v18  ;;  %963 = vmatprep.mubr.msk.f32.mxu0 %vm323_vm0, %v312_v21 }
  0x27   : > { %985 = vmatpush3.msra.mxu1 %v485_v18  ;;  %1017 = vmatprep.subr.mxu0 %v640_v30 }
  0x28   : > { %986 = vmatprep.subr.mxu1 %v484_v19  ;;  %1018 = vmatpush3.msra.mxu0 %v640_v30 }
  0x29   : > { %987 = vmatpush3.msra.mxu1 %v484_v19  ;;  %964 = vmatmul.mubr.msk.f32.gmra.mxu0 %vm323_vm0, %v313_v23 }
  0x2a   : > { %988 = vmatprep.subr.mxu1 %v483_v22  ;;  %1019 = vmatprep.subr.mxu0 %v639_v31 }
  0x2b   : > { %989 = vmatpush3.msra.mxu1 %v483_v22  ;;  %1020 = vmatpush3.msra.mxu0 %v639_v31 }
  0x2c   : > { %990 = vmatprep.subr.mxu1 %v482_v24  ;;  %1021 = vmatprep.subr.mxu0 %v638_v32 }
  0x2d   : > { %991 = vmatpush3.msra.mxu1 %v482_v24  ;;  %1022 = vmatpush3.msra.mxu0 %v638_v32 }
  0x2e   : > { %992 = vmatprep.subr.mxu1 %v481_v25  ;;  %1023 = vmatprep.subr.mxu0 %v637_v33 }
  0x2f   : > { %993 = vmatpush3.msra.mxu1 %v481_v25  ;;  %1024 = vmatpush3.msra.mxu0 %v637_v33 }
  0x30   : > { %994 = vmatprep.subr.mxu1 %v480_v26  ;;  %1025 = vmatprep.subr.mxu0 %v636_v34 }
  0x31   : > { %995 = vmatpush3.msra.mxu1 %v480_v26  ;;  %1026 = vmatpush3.msra.mxu0 %v636_v34 }
  0x32   : > { %996 = vmatprep.subr.mxu1 %v479_v27  ;;  %1027 = vmatprep.subr.mxu0 %v635_v35 }
  0x33   : > { %997 = vmatpush3.msra.mxu1 %v479_v27  ;;  %1028 = vmatpush3.msra.mxu0 %v635_v35 }
  0x34   : > { %1029 = vmatprep.subr.mxu0 %v634_v36 }
  0x35   : > { %1030 = vmatpush3.msra.mxu0 %v634_v36 }
  0x36   : > { %1031 = vmatprep.subr.mxu0 %v633_v37 }
  0x37   : > { %1032 = vmatpush3.msra.mxu0 %v633_v37 }
  0x38   : > { %1033 = vmatprep.subr.mxu0 %v632_v38 }
  0x39   : > { %1034 = vmatpush3.msra.mxu0 %v632_v38 }
  0x3a   : > { %1035 = vmatprep.subr.mxu0 %v631_v39 }
  0x3b   : > { %1036 = vmatpush3.msra.mxu0 %v631_v39 }
  0x3c   : > { %1037 = vmatprep.subr.mxu0 %v630_v7 }
  0x3d   : > { %1038 = vmatpush3.msra.mxu0 %v630_v7 }
  0x3e   : > { %1039 = vmatprep.subr.mxu0 %v629_v8 }
  0x3f   : > { %1040 = vmatpush3.msra.mxu0 %v629_v8 }
  0x40   : > { %1041 = vmatprep.subr.mxu0 %v628_v9 }
  0x41   : > { %1042 = vmatpush3.msra.mxu0 %v628_v9 }
  0x42   : > { %1043 = vmatprep.subr.mxu0 %v627_v10 }
  0x43   : > { %1044 = vmatpush3.msra.mxu0 %v627_v10 }
  0xd9   : > { %v953_v41 = vpop.f32.mrf.mxu0 }
  0xda   : > { %v426_v42 = vadd.f32 %v953_v41, %v862_v40 }
  0xdb   : > { %v420_v43 = vpop.f32.mrf.mxu0 }
  0xdc   : > { %v421_v44 = vadd.f32 %v862_v40, %v420_v43  ;;  %v470_v47 = vmax.f32 %v426_v42, 0.0  ;;  %v874_v42 = vld [vmem:[%s1478_s6] ss:$0 sm:$0xff] }
  0xdd   : > { %v956_v45 = vpop.f32.mrf.mxu0 }
  0xde   : > { %v469_v46 = vmax.f32 %v421_v44, 0.0  ;;  %v436_v48 = vadd.f32 %v956_v45, %v862_v40 }
  0xdf   : > { %v430_v49 = vpop.f32.mrf.mxu0 }
  0xe0   : > { %v431_v50 = vadd.f32 %v862_v40, %v430_v49  ;;  %998 = vmatprep.mubr.f32.mxu1 %v469_v46  ;;  %v472_v53 = vmax.f32 %v436_v48, 0.0 }
  0xe1   : > { %v959_v51 = vpop.f32.mrf.mxu0  ;;  %999 = vmatmul.mubr.f32.vlgmr.msra.gmra.mxu1 %v470_v47 }
  0xe2   : > { %v471_v52 = vmax.f32 %v431_v50, 0.0  ;;  %v446_v54 = vadd.f32 %v959_v51, %v862_v40 }
  0xe3   : > { %v440_v55 = vpop.f32.mrf.mxu0 }
  0xe4   : > { %v441_v56 = vadd.f32 %v862_v40, %v440_v55  ;;  %1001 = vmatprep.mubr.f32.mxu1 %v471_v52  ;;  %v474_v59 = vmax.f32 %v446_v54, 0.0 }
  0xe5   : > { %v962_v57 = vpop.f32.mrf.mxu0  ;;  %1002 = vmatmul.mubr.f32.gmra.mxu1 %v472_v53 }
  0xe6   : > { %v473_v58 = vmax.f32 %v441_v56, 0.0  ;;  %v456_v60 = vadd.f32 %v962_v57, %v862_v40 }
  0xe7   : > { %v450_v61 = vpop.f32.mrf.mxu0 }
  0xe8   : > { %v451_v62 = vadd.f32 %v862_v40, %v450_v61  ;;  %1004 = vmatprep.mubr.f32.mxu1 %v473_v58  ;;  %v476_v1 = vmax.f32 %v456_v60, 0.0 }
  0xe9   : > { %v965_v63 = vpop.f32.mrf.mxu0  ;;  %1005 = vmatmul.mubr.f32.gmra.mxu1 %v474_v59 }
  0xea   : > { %v475_v0 = vmax.f32 %v451_v62, 0.0  ;;  %v466_v2 = vadd.f32 %v965_v63, %v862_v40 }
  0xeb   : > { %v460_v3 = vpop.f32.mrf.mxu0 }
  0xec   : > { %v461_v4 = vadd.f32 %v862_v40, %v460_v3  ;;  %1007 = vmatprep.mubr.f32.mxu1 %v475_v0  ;;  %v478_v6 = vmax.f32 %v466_v2, 0.0 }
  0xed   : > { %1008 = vmatmul.mubr.f32.gmra.mxu1 %v476_v1 }
  0xee   : > { %v477_v5 = vmax.f32 %v461_v4, 0.0 }
  0xf0   : > { %1010 = vmatprep.mubr.f32.mxu1 %v477_v5 }
  0xf1   : > { %1011 = vmatmul.mubr.f32.gmra.mxu1 %v478_v6 }
 0x1a1   : > { %v1000_v12 = vpop.f32.mrf.mxu1 }
 0x1a2   : > { %v574_v13 = vadd.f32 %v1000_v12, %v873_v11 }
 0x1a3   : > { %v568_v14 = vpop.f32.mrf.mxu1 }
 0x1a4   : > { %v569_v15 = vadd.f32 %v873_v11, %v568_v14  ;;  %v618_v18 = vmax.f32 %v574_v13, 0.0 }
 0x1a5   : > { %v1003_v16 = vpop.f32.mrf.mxu1 }
 0x1a6   : > { %v617_v17 = vmax.f32 %v569_v15, 0.0  ;;  %v584_v19 = vadd.f32 %v1003_v16, %v873_v11 }
 0x1a7   : > { %v578_v20 = vpop.f32.mrf.mxu1 }
 0x1a8   : > { %v579_v21 = vadd.f32 %v873_v11, %v578_v20  ;;  %1045 = vmatprep.mubr.f32.mxu0 %v617_v17  ;;  %v620_v24 = vmax.f32 %v584_v19, 0.0 }
 0x1a9   : > { %v1006_v22 = vpop.f32.mrf.mxu1  ;;  %1046 = vmatmul.mubr.f32.vlgmr.msra.gmra.mxu0 %v618_v18 }
 0x1aa   : > { %v619_v23 = vmax.f32 %v579_v21, 0.0  ;;  %v594_v25 = vadd.f32 %v1006_v22, %v873_v11 }
 0x1ab   : > { %v588_v26 = vpop.f32.mrf.mxu1 }
 0x1ac   : > { %v589_v27 = vadd.f32 %v873_v11, %v588_v26  ;;  %1048 = vmatprep.mubr.f32.mxu0 %v619_v23  ;;  %v622_v30 = vmax.f32 %v594_v25, 0.0 }
 0x1ad   : > { %v1009_v28 = vpop.f32.mrf.mxu1  ;;  %1049 = vmatmul.mubr.f32.gmra.mxu0 %v620_v24 }
 0x1ae   : > { %v621_v29 = vmax.f32 %v589_v27, 0.0  ;;  %v604_v31 = vadd.f32 %v1009_v28, %v873_v11 }
 0x1af   : > { %v598_v32 = vpop.f32.mrf.mxu1 }
 0x1b0   : > { %v599_v33 = vadd.f32 %v873_v11, %v598_v32  ;;  %1051 = vmatprep.mubr.f32.mxu0 %v621_v29  ;;  %v624_v36 = vmax.f32 %v604_v31, 0.0 }
 0x1b1   : > { %v1012_v34 = vpop.f32.mrf.mxu1  ;;  %1052 = vmatmul.mubr.f32.gmra.mxu0 %v622_v30 }
 0x1b2   : > { %v623_v35 = vmax.f32 %v599_v33, 0.0  ;;  %v614_v37 = vadd.f32 %v1012_v34, %v873_v11 }
 0x1b3   : > { %v608_v38 = vpop.f32.mrf.mxu1 }
 0x1b4   : > { %v609_v39 = vadd.f32 %v873_v11, %v608_v38  ;;  %1054 = vmatprep.mubr.f32.mxu0 %v623_v35  ;;  %v626_v41 = vmax.f32 %v614_v37, 0.0 }
 0x1b5   : > { %1055 = vmatmul.mubr.f32.gmra.mxu0 %v624_v36 }
 0x1b6   : > { %v625_v40 = vmax.f32 %v609_v39, 0.0 }
 0x1b8   : > { %1057 = vmatprep.mubr.f32.mxu0 %v625_v40 }
 0x1b9   : > { %1058 = vmatmul.mubr.f32.gmra.mxu0 %v626_v41 }
 0x269   : > { %v1047_v43 = vpop.f32.mrf.mxu0 }
 0x26a   : > { %v722_v44 = vadd.f32 %v1047_v43, %v874_v42 }
 0x26b   : > { %v716_v45 = vpop.f32.mrf.mxu0 }
 0x26c   : > { %766 = vst [vmem:[%s1398_s16 + $0x8] sm:$0xff] %v722_v44  ;;  %v717_v46 = vadd.f32 %v874_v42, %v716_v45 }
 0x26d   : > { %v1050_v47 = vpop.f32.mrf.mxu0 }
 0x26e   : > { %765 = vst [vmem:[%s1398_s16] sm:$0xff] %v717_v46  ;;  %v732_v48 = vadd.f32 %v1050_v47, %v874_v42 }
 0x26f   : > { %v726_v49 = vpop.f32.mrf.mxu0 }
 0x270   : > { %768 = vst [vmem:[%s1398_s16 + $0x18] sm:$0xff] %v732_v48  ;;  %v727_v50 = vadd.f32 %v874_v42, %v726_v49 }
 0x271   : > { %v1053_v51 = vpop.f32.mrf.mxu0 }
 0x272   : > { %767 = vst [vmem:[%s1398_s16 + $0x10] sm:$0xff] %v727_v50  ;;  %v742_v52 = vadd.f32 %v1053_v51, %v874_v42 }
 0x273   : > { %v736_v53 = vpop.f32.mrf.mxu0 }
 0x274   : > { %770 = vst [vmem:[%s1398_s16 + $0x28] sm:$0xff] %v742_v52  ;;  %v737_v54 = vadd.f32 %v874_v42, %v736_v53 }
 0x275   : > { %v1056_v55 = vpop.f32.mrf.mxu0 }
 0x276   : > { %769 = vst [vmem:[%s1398_s16 + $0x20] sm:$0xff] %v737_v54  ;;  %v752_v56 = vadd.f32 %v1056_v55, %v874_v42 }
 0x277   : > { %v746_v57 = vpop.f32.mrf.mxu0 }
 0x278   : > { %772 = vst [vmem:[%s1398_s16 + $0x38] sm:$0xff] %v752_v56  ;;  %v747_v58 = vadd.f32 %v874_v42, %v746_v57 }
 0x279   : > { %v1059_v59 = vpop.f32.mrf.mxu0 }
 0x27a   : > { %771 = vst [vmem:[%s1398_s16 + $0x30] sm:$0xff] %v747_v58  ;;  %v762_v60 = vadd.f32 %v1059_v59, %v874_v42  ;;  %782 = sbr.rel (!%p1244_p5) target bundleno = 666 (0x29a), region = 52 }
 0x27b   : > { %v756_v61 = vpop.f32.mrf.mxu0 }
 0x27c   : > { %774 = vst [vmem:[%s1398_s16 + $0x48] sm:$0xff] %v762_v60  ;;  %v757_v62 = vadd.f32 %v874_v42, %v756_v61 }
 0x27e   : > { %773 = vst [vmem:[%s1398_s16 + $0x40] sm:$0xff] %v757_v62 }
 0x27f   : > { %s1487_s20 = smov (!%p785_p11, %s784_s20), 10 }
 0x280   : > { %s1417_s21 = sshll.u32 %s1487_s20, 7 }
 0x281   : > { %s789_s22 = ssub.s32 1280, %s1417_s21 }
 0x282   : > { %790 = vsyncadd %s1412_s18, %s789_s22  ;;  %p876_p12 = scmp.ne.s32.totalorder %s1417_s21, 0  ;;  %s882_s23 = smul.u32 1280, %s1227_s28 }
 0x283   : > { %s795_s29 = sshll.u32 %s1398_s16, 4  ;;  %s1163_s13 = smov [#allocation2]   ;;  %s1429_s29 = int_to_ptr.vmem [resolvable:$true] %s795_s29 }
 0x284   : > { %s1427_s9 = scalar_lea.hbm %s1479_s7, %s882_s23  ;;  %s1101_s17 = scalar_lea.vmem %s1429_s29, %s1417_s21 }
 0x285   : > { %p1102_p13 = scmp.ne.s32.totalorder %s1429_s29, %s1101_s17  ;;  %s1105_s19 = sshll.u32 %s1163_s13, 4  ;;  %s1106_s19 = int_to_ptr.vmem [resolvable:$false] %s1105_s19 }
 0x286   : > { %s1107_s28 = scalar_lea.vmem %s1106_s19, 2560  ;;  %p1108_p2 = scmp.lt.s32.totalorder %s1429_s29, %s1106_s19 }
 0x287   : > { %p1103_p0 = pnand %p1102_p13, %p876_p12  ;;  %p1109_p3 = scmp.lt.s32.totalorder %s1107_s28, %s1101_s17 }
 0x289   : > { %p1104_p1 = pneg %p1103_p0  ;;  %p1110_p4 = por %p1109_p3, %p1108_p2 }
 0x28b   : > { %p1111_p5 = pnand %p1110_p4, %p1104_p1 }
 0x28d   : > { %1114 = shalt.err (!%p1111_p5)
}
 0x28e   : > { %s1115_s14 = scalar_lea.hbm %s1427_s9, %s1417_s21  ;;  %s1119_s20 = scalar_lea.hbm %s1479_s7, 4864 }
 0x28f   : > { %p1116_p7 = scmp.ne.s32.totalorder %s1427_s9, %s1115_s14  ;;  %p1120_p10 = scmp.lt.s32.totalorder %s1427_s9, %s1479_s7 }
 0x290   : > { %p1121_p11 = scmp.lt.s32.totalorder %s1119_s20, %s1115_s14 }
 0x291   : > { %p1117_p8 = pnand %p1116_p7, %p876_p12 }
 0x292   : > { %p1122_p13 = por %p1121_p11, %p1120_p10 }
 0x293   : > { %p1118_p9 = pneg %p1117_p8 }
 0x295   : > { %p1123_p0 = pnand %p1122_p13, %p1118_p9 }
 0x297   : > { %1126 = shalt.err (!%p1123_p0)
}
 0x298   : > { %s1164_s11 = smov 128   ;;  %s1165_s8 = smov 8  }
 0x299   : > { %801 = dma.vmem_to_hbm [thread:$0]  (%p876_p12), %s1429_s29, %s1417_s21, %s1427_s9, %s1412_s18, %s1164_s11, %s1164_s11, %s1165_s8  }
 0x29a PF: > { %p1066_p1 = scmp.ge.s32.totalorder %s1161_s27, 2  ;;  %s810_s17 = sand.u32 1, %s1149_s24  }
 0x29b   : > { %s811_s13 = scalar_lea.sflag [#allocation3], %s810_s17 }
 0x29c   : > { %p1063_p2 = pnand %p1066_p1, %p1248_p6 }
 0x29e   : > { %p1064_p3 = pneg %p1063_p2 }
 0x2a0   : > { %1144 = dma.done.wait (%p1064_p3), %s811_s13, 1280  }
 0x2a1   : > { %1146 = vsyncadd (%p1064_p3), %s811_s13, 4294966016  ;;  %p17_p4 = scmp.ge.s32.totalorder %s1231_s30, 6   ;;  %s1482_s24 = smov %s1153_s25 }
 0x2a2   : > { %s1483_s25 = smov %s1157_s26  ;;  %s1484_s26 = smov %s1242_s10 }
 0x2a3   : > { %s1485_s27 = smov %s1231_s30  ;;  %19 = sbr.rel (!%p17_p4) target bundleno = 3 (0x3), region = 83 }
 0x2a8   :  { %816 = vsyncpa [#allocation3], 1 }
 0x2a9   :  { %818 = vsyncpa [#allocation3 + $0x1], 1 }

</bundles_post_ra>
